<compile_context>
chip_gen: v7x
topology: tpu7x:2x2x1
jax: 0.10.0
libtpu: 0.0.40
codegen_flags: <defaults>
</compile_context>

<pallas_src>
import math
from functools import partial

import jax
import jax.numpy as jnp
import numpy as np
from jax.experimental import pallas as pl
from jax.experimental.pallas import tpu as pltpu


# --------------------------------------------------------------- small helpers

def _sigmoid(v):
    # exact sigmoid via tanh: transcendental runs on the EUP slot, no VALU divide
    return 0.5 * jnp.tanh(0.5 * v) + 0.5


def _excite_sig(p, wsq, wex):
    """Shared Conv_Squeeze -> Conv_Excitation -> sigmoid on a (C, 1) pooled vec."""
    hmid = jnp.sum(p * wsq, axis=0, keepdims=True)      # (1, Cmid)
    e = jnp.sum(hmid * wex, axis=1, keepdims=True)      # (C, 1)
    return _sigmoid(e)


def _round_up(x, m):
    return (x + m - 1) // m * m


def _vmem_limit_bytes():
    cap = 64 * 1024 * 1024                 # conservative default (v7x per-core VMEM)
    try:
        cap = int(pltpu.get_tpu_info().vmem_capacity_bytes)
    except Exception:
        pass
    # leave headroom for Mosaic internal scratch / double-buffering
    return max(32 * 1024 * 1024, min(cap * 3 // 4, 112 * 1024 * 1024))


# ------------------------------------------------------------------- kernels

def _fused_kernel(u_ref, w_ref, o_ref, *, bs, c, cmid, hw, hw_pad):
    """One block of `bs` samples with channels folded on sublanes: (bs*C, HWpad)."""
    u = u_ref[...].astype(jnp.float32)                   # (bs*C, HWpad)
    w = w_ref[...].astype(jnp.float32)                   # (C, 2*Cmid+1)
    wsq = w[:, :cmid]                                    # Conv_Squeeze^T  (C, Cmid)
    wex = w[:, cmid:2 * cmid]                            # Conv_Excitation (C, Cmid)
    wsse = w[:, 2 * cmid:2 * cmid + 1]                   # sSE 1x1 conv    (C, 1)

    if hw_pad != hw:                                     # mask zero-padded lanes
        lane = jax.lax.broadcasted_iota(jnp.int32, u.shape, 1)
        valid = lane < hw
        u_sum = jnp.where(valid, u, 0.0)
        u_max = jnp.where(valid, u, -jnp.inf)
    else:
        u_sum, u_max = u, u
    avg = jnp.sum(u_sum, axis=1, keepdims=True) * (1.0 / hw)   # (bs*C, 1)
    mx = jnp.max(u_max, axis=1, keepdims=True)                 # (bs*C, 1)

    for b in range(bs):                                  # static, bs <= 8
        sl = slice(b * c, (b + 1) * c)
        u_b = u if bs == 1 else u[sl]
        avg_b = avg if bs == 1 else avg[sl]
        mx_b = mx if bs == 1 else mx[sl]
        gate = _excite_sig(avg_b, wsq, wex) + _excite_sig(mx_b, wsq, wex)  # (C,1)
        u_cse = u_b * gate                                                  # (C,HWp)
        q = _sigmoid(jnp.sum(u_cse * wsse, axis=0, keepdims=True))          # (1,HWp)
        o_ref[sl, :] = (u_cse * q + u_b).astype(o_ref.dtype)


def _stats_kernel(u_ref, w_ref, s_ref, sum_acc, max_acc, *, cmid, hw, t_hw, hw_pad):
    """Phase 1: accumulate per-channel sum/max over HW tiles, emit channel gate."""
    k = pl.program_id(1)
    u = u_ref[...].astype(jnp.float32)                   # (C, t_hw)

    if hw_pad != hw:
        lane = k * t_hw + jax.lax.broadcasted_iota(jnp.int32, u.shape, 1)
        valid = lane < hw
        u_sum = jnp.where(valid, u, 0.0)
        u_max = jnp.where(valid, u, -jnp.inf)
    else:
        u_sum, u_max = u, u
    part_sum = jnp.sum(u_sum, axis=1, keepdims=True)     # (C, 1)
    part_max = jnp.max(u_max, axis=1, keepdims=True)     # (C, 1)

    @pl.when(k == 0)
    def _():
        sum_acc[...] = part_sum
        max_acc[...] = part_max

    @pl.when(k > 0)
    def _():
        sum_acc[...] = sum_acc[...] + part_sum
        max_acc[...] = jnp.maximum(max_acc[...], part_max)

    # Gate math is tiny ((C, Cmid) work); recompute every step so the resident
    # output block always holds a valid value — the last tile's value lands in HBM.
    w = w_ref[...].astype(jnp.float32)
    wsq = w[:, :cmid]
    wex = w[:, cmid:2 * cmid]
    avg = sum_acc[...] * (1.0 / hw)
    s_ref[...] = _excite_sig(avg, wsq, wex) + _excite_sig(max_acc[...], wsq, wex)


def _apply_kernel(u_ref, s_ref, w_ref, o_ref, *, cmid):
    """Phase 2: u*s (cSE), sSE spatial gate, residual — per HW tile, fully parallel."""
    u = u_ref[...].astype(jnp.float32)                   # (C, t_hw)
    gate = s_ref[...]                                    # (C, 1) f32
    wsse = w_ref[...][:, 2 * cmid:2 * cmid + 1].astype(jnp.float32)
    u_cse = u * gate
    q = _sigmoid(jnp.sum(u_cse * wsse, axis=0, keepdims=True))   # (1, t_hw)
    o_ref[...] = (u_cse * q + u).astype(o_ref.dtype)


# --------------------------------------------------------------- call glue

def scse_forward(u_nchw, params, *, max_block_elems=None):
    """scSE forward. params = (w_sq (C/2,C), w_ex (C,C/2), w_sse (C,)).
    Output dtype == input dtype (math in f32 inside the kernel)."""
    w_sq, w_ex, w_sse = params
    n, c, h, w = u_nchw.shape
    cmid = w_sq.shape[0]
    hw = h * w
    dtype = u_nchw.dtype
    isz = u_nchw.dtype.itemsize

    # pack the three tiny 1x1-conv weights into ONE operand (kept f32; tiny)
    w_all = jnp.concatenate(
        [jnp.transpose(w_sq), w_ex, w_sse.reshape(c, 1)], axis=1
    ).astype(jnp.float32)                                 # (C, 2*Cmid+1)

    vmem_limit = _vmem_limit_bytes()
    # per-grid-step element budget: ~4 pipeline copies in the I/O dtype plus
    # ~3 f32-sized in-kernel temporaries, within 80% of the VMEM limit.
    elem_budget = max(8 * 128, int(0.8 * vmem_limit) // (4 * isz + 12))
    if max_block_elems is not None:
        elem_budget = max_block_elems

    def _cp(sems):
        return pltpu.CompilerParams(dimension_semantics=sems,
                                    vmem_limit_bytes=vmem_limit)

    u3 = u_nchw.reshape(n, c, hw)                         # free reshape, HW on lanes
    hw_pad = _round_up(hw, 128)

    # samples per block: fold batch onto the sublane axis when C < 8
    bs = 1
    for cand in range(1, 9):
        if (cand * c) % 8 == 0 and n % cand == 0:
            bs = cand
            break
    if bs > 1 and bs * c * hw_pad > elem_budget:
        bs = 1

    if bs * c * hw_pad <= elem_budget:
        # ---------------- fused single-pass path (small feature maps) ----------
        if hw_pad != hw:
            u3 = jnp.pad(u3, ((0, 0), (0, 0), (0, hw_pad - hw)))
        if (bs * c) % 8 == 0:
            u2 = u3.reshape(n * c, hw_pad)                # channels on sublanes
            out = pl.pallas_call(
                partial(_fused_kernel, bs=bs, c=c, cmid=cmid, hw=hw, hw_pad=hw_pad),
                out_shape=jax.ShapeDtypeStruct((n * c, hw_pad), dtype),
                grid=(n // bs,),
                in_specs=[
                    pl.BlockSpec((bs * c, hw_pad), lambda i: (i, 0)),
                    pl.BlockSpec(w_all.shape, lambda i: (0, 0)),
                ],
                out_specs=pl.BlockSpec((bs * c, hw_pad), lambda i: (i, 0)),
                compiler_params=_cp(("parallel",)),
            )(u2, w_all)
            out = out.reshape(n, c, hw_pad)
        else:
            # C not foldable to a multiple of 8: one sample per step (C = full dim)
            out = pl.pallas_call(
                partial(_fused_kernel, bs=1, c=c, cmid=cmid, hw=hw, hw_pad=hw_pad),
                out_shape=jax.ShapeDtypeStruct((n, c, hw_pad), dtype),
                grid=(n,),
                in_specs=[
                    pl.BlockSpec((None, c, hw_pad), lambda i: (i, 0, 0)),
                    pl.BlockSpec(w_all.shape, lambda i: (0, 0)),
                ],
                out_specs=pl.BlockSpec((None, c, hw_pad), lambda i: (i, 0, 0)),
                compiler_params=_cp(("parallel",)),
            )(u3, w_all)
    else:
        # ---------------- two-phase HW-tiled path (large feature maps) ---------
        t_hw = max(128, min(hw_pad, (elem_budget // c) // 128 * 128))
        hw_pad = _round_up(hw, t_hw)
        if hw_pad != hw:
            u3 = jnp.pad(u3, ((0, 0), (0, 0), (0, hw_pad - hw)))
        n_t = hw_pad // t_hw

        # phase 1: per-channel avg/max over HW tiles -> channel gate s (N, C, 1)
        s = pl.pallas_call(
            partial(_stats_kernel, cmid=cmid, hw=hw, t_hw=t_hw, hw_pad=hw_pad),
            out_shape=jax.ShapeDtypeStruct((n, c, 1), jnp.float32),
            grid=(n, n_t),
            in_specs=[
                pl.BlockSpec((None, c, t_hw), lambda b, k: (b, 0, k)),
                pl.BlockSpec(w_all.shape, lambda b, k: (0, 0)),
            ],
            out_specs=pl.BlockSpec((None, c, 1), lambda b, k: (b, 0, 0)),
            scratch_shapes=[pltpu.VMEM((c, 1), jnp.float32),
                            pltpu.VMEM((c, 1), jnp.float32)],
            compiler_params=_cp(("parallel", "arbitrary")),
        )(u3, w_all)

        # phase 2: apply channel gate, sSE spatial gate and residual per HW tile
        out = pl.pallas_call(
            partial(_apply_kernel, cmid=cmid),
            out_shape=jax.ShapeDtypeStruct((n, c, hw_pad), dtype),
            grid=(n, n_t),
            in_specs=[
                pl.BlockSpec((None, c, t_hw), lambda b, k: (b, 0, k)),
                pl.BlockSpec((None, c, 1), lambda b, k: (b, 0, 0)),
                pl.BlockSpec(w_all.shape, lambda b, k: (0, 0)),
            ],
            out_specs=pl.BlockSpec((None, c, t_hw), lambda b, k: (b, 0, k)),
            compiler_params=_cp(("parallel", "parallel")),
        )(u3, s, w_all)

    if hw_pad != hw:
        out = out[:, :, :hw]
    return out.reshape(n, c, h, w)


# -------------------------------------------------------- params & reference

def init_params(key, in_ch):
    cmid = in_ch // 2
    k1, k2, k3 = jax.random.split(key, 3)
    s1 = 1.0 / math.sqrt(in_ch)
    s2 = 1.0 / math.sqrt(cmid)
    w_sq = jax.random.uniform(k1, (cmid, in_ch), jnp.float32, -s1, s1)   # Conv_Squeeze
    w_ex = jax.random.uniform(k2, (in_ch, cmid), jnp.float32, -s2, s2)   # Conv_Excitation
    w_sse = jax.random.uniform(k3, (in_ch,), jnp.float32, -s1, s1)       # sSE Conv1x1
    return (w_sq, w_ex, w_sse)


def _ref_forward(u, params):
    """Pure-JAX reference matching the PyTorch scSE forward (NCHW, f32)."""
    w_sq, w_ex, w_sse = params
    avg = u.mean(axis=(2, 3))                         # (N, C)
    mx = u.max(axis=(2, 3))                           # (N, C)

    def excite(p):
        z = p @ w_sq.T                                # (N, C/2)
        z = z @ w_ex.T                                # (N, C)
        return jax.nn.sigmoid(z)

    s = excite(avg) + excite(mx)                      # (N, C)
    u_cse = u * s[:, :, None, None]
    q = jax.nn.sigmoid(jnp.einsum('nchw,c->nhw', u_cse, w_sse))[:, None]
    return u_cse * q + u


if __name__ == "__main__":
    key = jax.random.PRNGKey(0)
    ku, kp, kp8 = jax.random.split(key, 3)
    N, C, H, W = 2, 4, 16, 16

    u = jax.random.normal(ku, (N, C, H, W), jnp.float32)
    params = init_params(kp, C)
    ref = _ref_forward(u, params)

    # fused path (C=4 -> batch folded onto sublanes, 2 samples per block)
    out = jax.block_until_ready(scse_forward(u, params))
    assert out.shape == (N, C, H, W), out.shape
    assert out.dtype == u.dtype, out.dtype
    err = float(jnp.max(jnp.abs(out - ref)))
    assert np.isfinite(err) and err < 1e-3, f"fused max |err| = {err}"

    # force the two-phase HW-tiled path (tiny block budget -> 128-lane tiles)
    out_t = jax.block_until_ready(scse_forward(u, params, max_block_elems=C * 128))
    err_t = float(jnp.max(jnp.abs(out_t - ref)))
    assert np.isfinite(err_t) and err_t < 1e-3, f"tiled max |err| = {err_t}"

    # bf16 I/O (HBM traffic halved; arithmetic still f32 in-kernel), C=8 -> bs=1
    params8 = init_params(kp8, 8)
    u_bf = jax.random.normal(ku, (N, 8, H, W), jnp.float32).astype(jnp.bfloat16)
    ref_bf = _ref_forward(u_bf.astype(jnp.float32), params8)
    out_bf = jax.block_until_ready(scse_forward(u_bf, params8))
    assert out_bf.dtype == jnp.bfloat16
    err_bf = float(jnp.max(jnp.abs(out_bf.astype(jnp.float32) - ref_bf)))
    assert np.isfinite(err_bf) and err_bf < 5e-2, f"bf16 max |err| = {err_bf}"

    print("KERNEL_OK")
</pallas_src>

<mosaic_0001>
module attributes {stable_mosaic.version = 11 : i64} {
  func.func @_fused_kernel(%arg0: i32, %arg1: memref<8x256xf32, #tpu.memory_space<vmem>>, %arg2: memref<4x5xf32, #tpu.memory_space<vmem>>, %arg3: memref<8x256xf32, #tpu.memory_space<vmem>>) attributes {dimension_semantics = [#tpu.dimension_semantics<parallel>], iteration_bounds = array<i64: 1>, scalar_prefetch = 0 : i64, scratch_operands = 0 : i64, tpu.core_type = #tpu.core_type<tc>, window_params = [{transform_indices = @transform_0, window_bounds = array<i64: 8, 256>}, {pipeline_mode = #tpu.pipeline_mode<synchronous>, transform_indices = @transform_1, window_bounds = array<i64: 4, 5>}, {transform_indices = @transform_2, window_bounds = array<i64: 8, 256>}]} {
    %c0 = arith.constant 0 : index
    %c0_0 = arith.constant 0 : index
    %0 = vector.load %arg1[%c0, %c0_0] : memref<8x256xf32, #tpu.memory_space<vmem>>, vector<8x256xf32>
    %c0_1 = arith.constant 0 : index
    %c0_2 = arith.constant 0 : index
    %1 = vector.load %arg2[%c0_1, %c0_2] : memref<4x5xf32, #tpu.memory_space<vmem>>, vector<4x5xf32>
    %2 = vector.extract_strided_slice %1 {offsets = [0, 0], sizes = [4, 2], strides = [1, 1]} : vector<4x5xf32> to vector<4x2xf32>
    %3 = vector.extract_strided_slice %1 {offsets = [0, 2], sizes = [4, 2], strides = [1, 1]} : vector<4x5xf32> to vector<4x2xf32>
    %4 = vector.extract_strided_slice %1 {offsets = [0, 4], sizes = [4, 1], strides = [1, 1]} : vector<4x5xf32> to vector<4x1xf32>
    %cst = arith.constant dense<0.000000e+00> : vector<8xf32>
    %5 = vector.multi_reduction <add>, %0, %cst [1] : vector<8x256xf32> to vector<8xf32>
    %6 = vector.shape_cast %5 : vector<8xf32> to vector<8x1xf32>
    %cst_3 = arith.constant 3.906250e-03 : f32
    %7 = vector.broadcast %cst_3 : f32 to vector<8x1xf32>
    %8 = arith.mulf %6, %7 : vector<8x1xf32>
    %cst_4 = arith.constant dense<0xFF800000> : vector<8xf32>
    %9 = vector.multi_reduction <maximumf>, %0, %cst_4 [1] : vector<8x256xf32> to vector<8xf32>
    %10 = vector.shape_cast %9 : vector<8xf32> to vector<8x1xf32>
    %11 = vector.extract_strided_slice %0 {offsets = [0, 0], sizes = [4, 256], strides = [1, 1]} : vector<8x256xf32> to vector<4x256xf32>
    %12 = vector.extract_strided_slice %8 {offsets = [0, 0], sizes = [4, 1], strides = [1, 1]} : vector<8x1xf32> to vector<4x1xf32>
    %13 = vector.extract_strided_slice %10 {offsets = [0, 0], sizes = [4, 1], strides = [1, 1]} : vector<8x1xf32> to vector<4x1xf32>
    %14 = vector.broadcast %12 : vector<4x1xf32> to vector<4x2xf32>
    %15 = arith.mulf %14, %2 : vector<4x2xf32>
    %cst_5 = arith.constant dense<0.000000e+00> : vector<2xf32>
    %16 = vector.multi_reduction <add>, %15, %cst_5 [0] : vector<4x2xf32> to vector<2xf32>
    %17 = vector.shape_cast %16 : vector<2xf32> to vector<1x2xf32>
    %18 = vector.broadcast %17 : vector<1x2xf32> to vector<4x2xf32>
    %19 = arith.mulf %18, %3 : vector<4x2xf32>
    %cst_6 = arith.constant dense<0.000000e+00> : vector<4xf32>
    %20 = vector.multi_reduction <add>, %19, %cst_6 [1] : vector<4x2xf32> to vector<4xf32>
    %21 = vector.shape_cast %20 : vector<4xf32> to vector<4x1xf32>
    %cst_7 = arith.constant 5.000000e-01 : f32
    %22 = vector.broadcast %cst_7 : f32 to vector<4x1xf32>
    %23 = arith.mulf %22, %21 : vector<4x1xf32>
    %24 = math.tanh %23 : vector<4x1xf32>
    %cst_8 = arith.constant 5.000000e-01 : f32
    %25 = vector.broadcast %cst_8 : f32 to vector<4x1xf32>
    %26 = arith.mulf %25, %24 : vector<4x1xf32>
    %cst_9 = arith.constant 5.000000e-01 : f32
    %27 = vector.broadcast %cst_9 : f32 to vector<4x1xf32>
    %28 = arith.addf %26, %27 : vector<4x1xf32>
    %29 = vector.broadcast %13 : vector<4x1xf32> to vector<4x2xf32>
    %30 = arith.mulf %29, %2 : vector<4x2xf32>
    %cst_10 = arith.constant dense<0.000000e+00> : vector<2xf32>
    %31 = vector.multi_reduction <add>, %30, %cst_10 [0] : vector<4x2xf32> to vector<2xf32>
    %32 = vector.shape_cast %31 : vector<2xf32> to vector<1x2xf32>
    %33 = vector.broadcast %32 : vector<1x2xf32> to vector<4x2xf32>
    %34 = arith.mulf %33, %3 : vector<4x2xf32>
    %cst_11 = arith.constant dense<0.000000e+00> : vector<4xf32>
    %35 = vector.multi_reduction <add>, %34, %cst_11 [1] : vector<4x2xf32> to vector<4xf32>
    %36 = vector.shape_cast %35 : vector<4xf32> to vector<4x1xf32>
    %cst_12 = arith.constant 5.000000e-01 : f32
    %37 = vector.broadcast %cst_12 : f32 to vector<4x1xf32>
    %38 = arith.mulf %37, %36 : vector<4x1xf32>
    %39 = math.tanh %38 : vector<4x1xf32>
    %cst_13 = arith.constant 5.000000e-01 : f32
    %40 = vector.broadcast %cst_13 : f32 to vector<4x1xf32>
    %41 = arith.mulf %40, %39 : vector<4x1xf32>
    %cst_14 = arith.constant 5.000000e-01 : f32
    %42 = vector.broadcast %cst_14 : f32 to vector<4x1xf32>
    %43 = arith.addf %41, %42 : vector<4x1xf32>
    %44 = arith.addf %28, %43 : vector<4x1xf32>
    %45 = vector.broadcast %44 : vector<4x1xf32> to vector<4x256xf32>
    %46 = arith.mulf %11, %45 : vector<4x256xf32>
    %47 = vector.broadcast %4 : vector<4x1xf32> to vector<4x256xf32>
    %48 = arith.mulf %46, %47 : vector<4x256xf32>
    %cst_15 = arith.constant dense<0.000000e+00> : vector<256xf32>
    %49 = vector.multi_reduction <add>, %48, %cst_15 [0] : vector<4x256xf32> to vector<256xf32>
    %50 = vector.shape_cast %49 : vector<256xf32> to vector<1x256xf32>
    %cst_16 = arith.constant 5.000000e-01 : f32
    %51 = vector.broadcast %cst_16 : f32 to vector<1x256xf32>
    %52 = arith.mulf %51, %50 : vector<1x256xf32>
    %53 = math.tanh %52 : vector<1x256xf32>
    %cst_17 = arith.constant 5.000000e-01 : f32
    %54 = vector.broadcast %cst_17 : f32 to vector<1x256xf32>
    %55 = arith.mulf %54, %53 : vector<1x256xf32>
    %cst_18 = arith.constant 5.000000e-01 : f32
    %56 = vector.broadcast %cst_18 : f32 to vector<1x256xf32>
    %57 = arith.addf %55, %56 : vector<1x256xf32>
    %58 = vector.broadcast %57 : vector<1x256xf32> to vector<4x256xf32>
    %59 = arith.mulf %46, %58 : vector<4x256xf32>
    %60 = arith.addf %59, %11 : vector<4x256xf32>
    %c0_19 = arith.constant 0 : index
    %c0_20 = arith.constant 0 : index
    %61 = vector.load %arg3[%c0_19, %c0_20] : memref<8x256xf32, #tpu.memory_space<vmem>>, vector<4x256xf32>
    tpu.vector_store %arg3[%c0_19, %c0_20], %60 {strides = array<i32>} : memref<8x256xf32, #tpu.memory_space<vmem>>, vector<4x256xf32>,
    %62 = vector.extract_strided_slice %0 {offsets = [4, 0], sizes = [4, 256], strides = [1, 1]} : vector<8x256xf32> to vector<4x256xf32>
    %63 = vector.extract_strided_slice %8 {offsets = [4, 0], sizes = [4, 1], strides = [1, 1]} : vector<8x1xf32> to vector<4x1xf32>
    %64 = vector.extract_strided_slice %10 {offsets = [4, 0], sizes = [4, 1], strides = [1, 1]} : vector<8x1xf32> to vector<4x1xf32>
    %65 = vector.broadcast %63 : vector<4x1xf32> to vector<4x2xf32>
    %66 = arith.mulf %65, %2 : vector<4x2xf32>
    %cst_21 = arith.constant dense<0.000000e+00> : vector<2xf32>
    %67 = vector.multi_reduction <add>, %66, %cst_21 [0] : vector<4x2xf32> to vector<2xf32>
    %68 = vector.shape_cast %67 : vector<2xf32> to vector<1x2xf32>
    %69 = vector.broadcast %68 : vector<1x2xf32> to vector<4x2xf32>
    %70 = arith.mulf %69, %3 : vector<4x2xf32>
    %cst_22 = arith.constant dense<0.000000e+00> : vector<4xf32>
    %71 = vector.multi_reduction <add>, %70, %cst_22 [1] : vector<4x2xf32> to vector<4xf32>
    %72 = vector.shape_cast %71 : vector<4xf32> to vector<4x1xf32>
    %cst_23 = arith.constant 5.000000e-01 : f32
    %73 = vector.broadcast %cst_23 : f32 to vector<4x1xf32>
    %74 = arith.mulf %73, %72 : vector<4x1xf32>
    %75 = math.tanh %74 : vector<4x1xf32>
    %cst_24 = arith.constant 5.000000e-01 : f32
    %76 = vector.broadcast %cst_24 : f32 to vector<4x1xf32>
    %77 = arith.mulf %76, %75 : vector<4x1xf32>
    %cst_25 = arith.constant 5.000000e-01 : f32
    %78 = vector.broadcast %cst_25 : f32 to vector<4x1xf32>
    %79 = arith.addf %77, %78 : vector<4x1xf32>
    %80 = vector.broadcast %64 : vector<4x1xf32> to vector<4x2xf32>
    %81 = arith.mulf %80, %2 : vector<4x2xf32>
    %cst_26 = arith.constant dense<0.000000e+00> : vector<2xf32>
    %82 = vector.multi_reduction <add>, %81, %cst_26 [0] : vector<4x2xf32> to vector<2xf32>
    %83 = vector.shape_cast %82 : vector<2xf32> to vector<1x2xf32>
    %84 = vector.broadcast %83 : vector<1x2xf32> to vector<4x2xf32>
    %85 = arith.mulf %84, %3 : vector<4x2xf32>
    %cst_27 = arith.constant dense<0.000000e+00> : vector<4xf32>
    %86 = vector.multi_reduction <add>, %85, %cst_27 [1] : vector<4x2xf32> to vector<4xf32>
    %87 = vector.shape_cast %86 : vector<4xf32> to vector<4x1xf32>
    %cst_28 = arith.constant 5.000000e-01 : f32
    %88 = vector.broadcast %cst_28 : f32 to vector<4x1xf32>
    %89 = arith.mulf %88, %87 : vector<4x1xf32>
    %90 = math.tanh %89 : vector<4x1xf32>
    %cst_29 = arith.constant 5.000000e-01 : f32
    %91 = vector.broadcast %cst_29 : f32 to vector<4x1xf32>
    %92 = arith.mulf %91, %90 : vector<4x1xf32>
    %cst_30 = arith.constant 5.000000e-01 : f32
    %93 = vector.broadcast %cst_30 : f32 to vector<4x1xf32>
    %94 = arith.addf %92, %93 : vector<4x1xf32>
    %95 = arith.addf %79, %94 : vector<4x1xf32>
    %96 = vector.broadcast %95 : vector<4x1xf32> to vector<4x256xf32>
    %97 = arith.mulf %62, %96 : vector<4x256xf32>
    %98 = vector.broadcast %4 : vector<4x1xf32> to vector<4x256xf32>
    %99 = arith.mulf %97, %98 : vector<4x256xf32>
    %cst_31 = arith.constant dense<0.000000e+00> : vector<256xf32>
    %100 = vector.multi_reduction <add>, %99, %cst_31 [0] : vector<4x256xf32> to vector<256xf32>
    %101 = vector.shape_cast %100 : vector<256xf32> to vector<1x256xf32>
    %cst_32 = arith.constant 5.000000e-01 : f32
    %102 = vector.broadcast %cst_32 : f32 to vector<1x256xf32>
    %103 = arith.mulf %102, %101 : vector<1x256xf32>
    %104 = math.tanh %103 : vector<1x256xf32>
    %cst_33 = arith.constant 5.000000e-01 : f32
    %105 = vector.broadcast %cst_33 : f32 to vector<1x256xf32>
    %106 = arith.mulf %105, %104 : vector<1x256xf32>
    %cst_34 = arith.constant 5.000000e-01 : f32
    %107 = vector.broadcast %cst_34 : f32 to vector<1x256xf32>
    %108 = arith.addf %106, %107 : vector<1x256xf32>
    %109 = vector.broadcast %108 : vector<1x256xf32> to vector<4x256xf32>
    %110 = arith.mulf %97, %109 : vector<4x256xf32>
    %111 = arith.addf %110, %62 : vector<4x256xf32>
    %c4 = arith.constant 4 : index
    %c0_35 = arith.constant 0 : index
    %112 = vector.load %arg3[%c4, %c0_35] : memref<8x256xf32, #tpu.memory_space<vmem>>, vector<4x256xf32>
    tpu.vector_store %arg3[%c4, %c0_35], %111 {strides = array<i32>} : memref<8x256xf32, #tpu.memory_space<vmem>>, vector<4x256xf32>,
    return
  }
  func.func @transform_0(%arg0: i32) -> (i32, i32) {
    %c0_i32 = arith.constant 0 : i32
    %c0_i32_0 = arith.constant 0 : i32
    return %arg0, %c0_i32 : i32, i32
  }
  func.func @transform_1(%arg0: i32) -> (i32, i32) {
    %c0_i32 = arith.constant 0 : i32
    %c0_i32_0 = arith.constant 0 : i32
    %c0_i32_1 = arith.constant 0 : i32
    return %c0_i32, %c0_i32_0 : i32, i32
  }
  func.func @transform_2(%arg0: i32) -> (i32, i32) {
    %c0_i32 = arith.constant 0 : i32
    %c0_i32_0 = arith.constant 0 : i32
    return %arg0, %c0_i32 : i32, i32
  }
}

</mosaic_0001>

<bundles_post_ra>
// kernel: tpu_custom_call.1
= control target key start
LH: loop header
LB: loop body
LE: loop exit
PB: predicated region body
PF: predicated region fallthrough
CT: control target
= control target key end

     0   :  { %7 = vsyncpa [#allocation3], 0  ;;  %s395_s0 = inlined_call_operand.hbm [shape: f32[8,256], index: 0, kind: input, shape index: {}]   ;;  %s396_s1 = inlined_call_operand.hbm [shape: f32[4,5], index: 1, kind: input, shape index: {}]   ;;  %s397_s2 = inlined_call_operand.hbm [shape: f32[8,256], index: 2, kind: output, shape index: {}]  }
   0x1   :  { %8 = vsyncpa [#allocation6], 0 }
   0x2   :  { %9 = vsyncpa [#allocation4], 0  ;;  %s315_s9 = smov [#allocation2]   ;;  %s316_s11 = smov [#allocation5]  }
   0x3   :  { %s16_s10 = sshll.u32 %s315_s9, 4  ;;  %s26_s12 = sshll.u32 %s316_s11, 4  ;;  %s17_s10 = int_to_ptr.vmem [resolvable:$true] %s16_s10  ;;  %s27_s12 = int_to_ptr.vmem [resolvable:$true] %s26_s12 }
   0x4   :  { %s243_s15 = scalar_lea.hbm %s395_s0, 256 }
   0x5   :  { %p244_p0 = scmp.ne.s32.totalorder %s395_s0, %s243_s15  ;;  %p247_p1 = scmp.lt.u32.totalorder %s243_s15, %s395_s0 }
   0x7   :  { %p249_p2 = pnand %p247_p1, %p244_p0 }
   0x9   :  { %252 = shalt.err (!%p249_p2)
}
   0xa   :  { %s253_s20 = scalar_lea.vmem %s17_s10, 256  ;;  %p258_p4 = scmp.lt.s32.totalorder %s17_s10, %s17_s10 }
   0xb   :  { %p254_p3 = scmp.ne.s32.totalorder %s17_s10, %s253_s20  ;;  %p259_p5 = scmp.lt.s32.totalorder %s253_s20, %s253_s20 }
   0xd   :  { %p260_p6 = por %p259_p5, %p258_p4 }
   0xf   :  { %p261_p7 = pnand %p260_p6, %p254_p3 }
  0x11   :  { %264 = shalt.err (!%p261_p7)
}
  0x12   :  { %19 = dma.hbm_to_vmem [thread:$0]  %s395_s0, 256, %s17_s10, [#allocation3]  }
  0x13   :  { %s265_s25 = scalar_lea.hbm %s396_s1, 64 }
  0x14   :  { %p266_p8 = scmp.ne.s32.totalorder %s396_s1, %s265_s25  ;;  %p269_p9 = scmp.lt.u32.totalorder %s265_s25, %s396_s1 }
  0x16   :  { %p271_p10 = pnand %p269_p9, %p266_p8 }
  0x18   :  { %274 = shalt.err (!%p271_p10)
}
  0x19   :  { %s275_s30 = scalar_lea.vmem %s27_s12, 64  ;;  %p280_p12 = scmp.lt.s32.totalorder %s27_s12, %s27_s12 }
  0x1a   :  { %p276_p11 = scmp.ne.s32.totalorder %s27_s12, %s275_s30  ;;  %p281_p13 = scmp.lt.s32.totalorder %s275_s30, %s275_s30 }
  0x1c   :  { %p282_p0 = por %p281_p13, %p280_p12 }
  0x1e   :  { %p283_p1 = pnand %p282_p0, %p276_p11 }
  0x20   :  { %286 = shalt.err (!%p283_p1)
}
  0x21   :  { %29 = dma.hbm_to_vmem [thread:$0]  %s396_s1, 64, %s27_s12, [#allocation6]  }
  0x22   :  { %309 = dma.done.wait [#allocation3], 256  }
  0x23   :  { %310 = vsyncadd [#allocation3], 4294967040 }
  0x24   :  { %311 = dma.done.wait [#allocation6], 64  }
  0x25   :  { %312 = vsyncadd [#allocation6], 4294967232  ;;  %v359_v0 = vld [vmem:[#allocation2] sm:$0xff]  ;;  %v361_v1 = vld [vmem:[#allocation2 + $0x8] sm:$0xff]  ;;  %s317_s4 = smov 126   ;;  %v318_v5 = vmov 4  }
  0x26   :  { %v38_v2 = vld [vmem:[#allocation5] sm:$0xf]  ;;  %v39_v3 = vadd.f32 %v361_v1, %v359_v0  ;;  %v43_v4 = vmax.f32 %v359_v0, %v361_v1  ;;  %226 = vset.pattern.permute.xlu0 %v318_v5  ;;  %vm47_vm0 = vcmask 11264   ;;  %vm92_vm1 = vcmask 1043456   ;;  %s319_s1 = smov [#allocation7]  }
  0x27   :  { %56 = vrot.lane.b32.xlu1 %v38_v2, %s317_s4  ;;  %v121_v6 = vrot.slane %v38_v2, 4  ;;  %s211_s5 = sshll.u32 %s319_s1, 4  ;;  %s212_s5 = int_to_ptr.vmem [resolvable:$true] %s211_s5 }
  0x28   :  { %40 = vadd.xlane.f32.xlu0 %v39_v3  ;;  %s287_s6 = scalar_lea.vmem %s212_s5, 256  ;;  %p292_p3 = scmp.lt.s32.totalorder %s212_s5, %s212_s5 }
  0x29   :  { %p288_p2 = scmp.ne.s32.totalorder %s212_s5, %s287_s6  ;;  %p293_p4 = scmp.lt.s32.totalorder %s287_s6, %s287_s6 }
  0x2b   :  { %p294_p5 = por %p293_p4, %p292_p3 }
  0x2c   :  { %44 = vmax.xlane.f32.xlu0 %v43_v4 }
  0x2d   :  { %p295_p6 = pnand %p294_p5, %p288_p2 }
  0x99   :  { %v57_v40 = vpop.permute.xlu1 %56 }
  0xb5   :  { %v41_v7 = vpop.xlane.xlu0 %40 }
  0xb6   :  { %v42_v8 = vmul.f32 0.00390625, %v41_v7 }
  0xb8   :  { %v46_v9 = vmul.f32 %v42_v8, %v38_v2  ;;  %v123_v10 = vmul.f32 %v121_v6, %v42_v8 }
  0xb9   :  { %v45_v11 = vpop.xlane.xlu0 %44 }
  0xba   :  { %v48_v12 = vsel %vm47_vm0, %v46_v9, 0.0  ;;  %v125_v13 = vrot.slane %v123_v10, 4  ;;  %v67_v14 = vmul.f32 %v45_v11, %v38_v2  ;;  %v142_v15 = vmul.f32 %v121_v6, %v45_v11 }
  0xbb   :  { %v49_v16 = vrot.slane %v48_v12, 4 }
  0xbc   :  { %v127_v17 = vsel %vm47_vm0, %v125_v13, 0.0  ;;  %v68_v18 = vsel %vm47_vm0, %v67_v14, 0.0  ;;  %v144_v19 = vrot.slane %v142_v15, 4 }
  0xbd   :  { %v50_v20 = vadd.f32 %v49_v16, %v48_v12  ;;  %v128_v21 = vrot.slane %v127_v17, 4  ;;  %v69_v22 = vrot.slane %v68_v18, 4 }
  0xbe   :  { %v146_v23 = vsel %vm47_vm0, %v144_v19, 0.0 }
  0xbf   :  { %v51_v24 = vrot.slane %v50_v20, 2  ;;  %v129_v25 = vadd.f32 %v128_v21, %v127_v17  ;;  %v70_v26 = vadd.f32 %v69_v22, %v68_v18  ;;  %v147_v27 = vrot.slane %v146_v23, 4 }
  0xc1   :  { %v130_v28 = vrot.slane %v129_v25, 2  ;;  %v71_v29 = vrot.slane %v70_v26, 2  ;;  %v148_v30 = vadd.f32 %v147_v27, %v146_v23  ;;  %v52_v31 = vadd.f32 %v51_v24, %v50_v20 }
  0xc3   :  { %v149_v32 = vrot.slane %v148_v30, 2  ;;  %v131_v33 = vadd.f32 %v130_v28, %v129_v25  ;;  %v53_v36 = vrot.slane %v52_v31, 1  ;;  %v72_v37 = vadd.f32 %v71_v29, %v70_v26 }
  0xc5   :  { %v132_v34 = vrot.slane %v131_v33, 1  ;;  %v150_v35 = vadd.f32 %v149_v32, %v148_v30  ;;  %v54_v43 = vadd.f32 %v53_v36, %v52_v31  ;;  %v73_v44 = vrot.slane %v72_v37, 1 }
  0xc7   :  { %v133_v38 = vadd.f32 %v132_v34, %v131_v33  ;;  %v151_v39 = vrot.slane %v150_v35, 1  ;;  %v59_v48 = vmul.f32 %v57_v40, %v54_v43  ;;  %v74_v49 = vadd.f32 %v73_v44, %v72_v37 }
  0xc9   :  { %v134_v41 = vmul.f32 %v133_v38, %v57_v40  ;;  %v152_v42 = vadd.f32 %v151_v39, %v150_v35  ;;  %v60_v50 = vsel %vm47_vm0, %v59_v48, 0.0  ;;  %v75_v51 = vmul.f32 %v74_v49, %v57_v40 }
  0xcb   :  { %v135_v45 = vsel %vm47_vm0, %v134_v41, 0.0  ;;  %v153_v46 = vmul.f32 %v152_v42, %v57_v40  ;;  %v76_v52 = vsel %vm47_vm0, %v75_v51, 0.0 }
  0xcc   :  { %136 = vadd.xlane.f32.xlu1 %v135_v45 }
  0xcd   :  { %v154_v47 = vsel %vm47_vm0, %v153_v46, 0.0 }
  0xce   :  { %155 = vadd.xlane.f32.xlu0 %v154_v47 }
  0xd2   :  { %61 = vadd.xlane.f32.xlu0 %v60_v50 }
  0xd6   :  { %77 = vadd.xlane.f32.xlu0 %v76_v52 }
  0xec   :  { %87 = vperm.xlu0 %226, %v38_v2  }
 0x159   :  { %v137_v53 = vpop.xlane.xlu1 %136 }
 0x15a   :  { %v138_v54 = vmul.f32 0.5, %v137_v53 }
 0x15b   :  { %v156_v55 = vpop.xlane.xlu0 %155 }
 0x15c   :  { %227 = vtanh.f32 %v138_v54  ;;  %v157_v56 = vmul.f32 0.5, %v156_v55 }
 0x15e   :  { %229 = vtanh.f32 %v157_v56 }
 0x15f   :  { %v62_v57 = vpop.xlane.xlu0 %61 }
 0x160   :  { %v63_v58 = vmul.f32 0.5, %v62_v57 }
 0x162   :  { %231 = vtanh.f32 %v63_v58 }
 0x163   :  { %v78_v59 = vpop.xlane.xlu0 %77 }
 0x164   :  { %v79_v60 = vmul.f32 0.5, %v78_v59 }
 0x166   :  { %v228_v61 = vpop.eup %227  ;;  %233 = vtanh.f32 %v79_v60 }
 0x167   :  { %v140_v62 = vmul.f32 0.5, %v228_v61 }
 0x168   :  { %v230_v63 = vpop.eup %229 }
 0x169   :  { %v159_v3 = vmul.f32 0.5, %v230_v63  ;;  %v141_v4 = vadd.f32 0.5, %v140_v62 }
 0x16b   :  { %v160_v5 = vadd.f32 0.5, %v159_v3  ;;  %v88_v2 = vpop.permute.xlu0 %87 }
 0x16c   :  { %v232_v6 = vpop.eup %231  ;;  %v167_v10 = vrot.slane %v88_v2, 4 }
 0x16d   :  { %v161_v7 = vadd.f32 %v160_v5, %v141_v4  ;;  %v65_v9 = vmul.f32 0.5, %v232_v6 }
 0x16f   :  { %v163_v8 = vrot.slane %v161_v7, 4  ;;  %v66_v15 = vadd.f32 0.5, %v65_v9 }
 0x170   :  { %v234_v11 = vpop.eup %233 }
 0x171   :  { %v81_v12 = vmul.f32 0.5, %v234_v11  ;;  %v165_v13 = vmul.f32 %v163_v8, %v359_v0  ;;  %v166_v14 = vmul.f32 %v163_v8, %v361_v1 }
 0x173   :  { %v82_v16 = vadd.f32 0.5, %v81_v12  ;;  %v169_v17 = vmul.f32 %v167_v10, %v165_v13  ;;  %v170_v18 = vmul.f32 %v167_v10, %v166_v14 }
 0x175   :  { %v83_v19 = vadd.f32 %v82_v16, %v66_v15  ;;  %v173_v20 = vrot.slane %v169_v17, 4  ;;  %v174_v21 = vrot.slane %v170_v18, 4 }
 0x177   :  { %v84_v22 = vmul.f32 %v83_v19, %v359_v0  ;;  %v85_v23 = vmul.f32 %v83_v19, %v361_v1  ;;  %v177_v24 = vsel %vm92_vm1, %v173_v20, 0.0  ;;  %v184_v25 = vsel %vm92_vm1, %v174_v21, 0.0 }
 0x178   :  { %v178_v26 = vrot.slane %v177_v24, 4  ;;  %v185_v27 = vrot.slane %v184_v25, 4 }
 0x179   :  { %v90_v28 = vmul.f32 %v88_v2, %v84_v22  ;;  %v91_v29 = vmul.f32 %v88_v2, %v85_v23 }
 0x17a   :  { %v179_v30 = vadd.f32 %v178_v26, %v177_v24  ;;  %v186_v31 = vadd.f32 %v185_v27, %v184_v25 }
 0x17b   :  { %v93_v32 = vsel %vm92_vm1, %v90_v28, 0.0  ;;  %v100_v33 = vsel %vm92_vm1, %v91_v29, 0.0 }
 0x17c   :  { %v94_v34 = vrot.slane %v93_v32, 4  ;;  %v101_v35 = vrot.slane %v100_v33, 4  ;;  %v180_v36 = vrot.slane %v179_v30, 2  ;;  %v187_v37 = vrot.slane %v186_v31, 2 }
 0x17e   :  { %v95_v38 = vadd.f32 %v94_v34, %v93_v32  ;;  %v102_v39 = vadd.f32 %v101_v35, %v100_v33  ;;  %v181_v40 = vadd.f32 %v180_v36, %v179_v30  ;;  %v188_v41 = vadd.f32 %v187_v37, %v186_v31 }
 0x180   :  { %v96_v42 = vrot.slane %v95_v38, 2  ;;  %v103_v43 = vrot.slane %v102_v39, 2  ;;  %v182_v44 = vrot.slane %v181_v40, 1  ;;  %v189_v45 = vrot.slane %v188_v41, 1 }
 0x182   :  { %v97_v46 = vadd.f32 %v96_v42, %v95_v38  ;;  %v104_v47 = vadd.f32 %v103_v43, %v102_v39  ;;  %v183_v48 = vadd.f32 %v182_v44, %v181_v40  ;;  %v190_v49 = vadd.f32 %v189_v45, %v188_v41 }
 0x184   :  { %v98_v50 = vrot.slane %v97_v46, 1  ;;  %v105_v51 = vrot.slane %v104_v47, 1  ;;  %v191_v52 = vmul.f32 0.5, %v183_v48  ;;  %v192_v53 = vmul.f32 0.5, %v190_v49 }
 0x186   :  { %v99_v54 = vadd.f32 %v98_v50, %v97_v46  ;;  %v106_v55 = vadd.f32 %v105_v51, %v104_v47  ;;  %235 = vtanh.f32 %v191_v52 }
 0x187   :  { %237 = vtanh.f32 %v192_v53 }
 0x188   :  { %v107_v56 = vmul.f32 0.5, %v99_v54  ;;  %v108_v57 = vmul.f32 0.5, %v106_v55 }
 0x18a   :  { %239 = vtanh.f32 %v107_v56 }
 0x18b   :  { %241 = vtanh.f32 %v108_v57 }
 0x190   :  { %v236_v58 = vpop.eup %235 }
 0x191   :  { %v238_v59 = vpop.eup %237  ;;  %v195_v60 = vmul.f32 0.5, %v236_v58 }
 0x192   :  { %v196_v61 = vmul.f32 0.5, %v238_v59 }
 0x193   :  { %v197_v62 = vadd.f32 0.5, %v195_v60 }
 0x194   :  { %v240_v63 = vpop.eup %239  ;;  %v198_v3 = vadd.f32 0.5, %v196_v61 }
 0x195   :  { %v242_v4 = vpop.eup %241  ;;  %v111_v5 = vmul.f32 0.5, %v240_v63  ;;  %v199_v6 = vmul.f32 %v197_v62, %v165_v13 }
 0x196   :  { %v112_v2 = vmul.f32 0.5, %v242_v4  ;;  %v200_v7 = vmul.f32 %v198_v3, %v166_v14 }
 0x197   :  { %v113_v8 = vadd.f32 0.5, %v111_v5  ;;  %v201_v9 = vadd.f32 %v199_v6, %v359_v0 }
 0x198   :  { %v114_v10 = vadd.f32 0.5, %v112_v2  ;;  %v202_v11 = vadd.f32 %v200_v7, %v361_v1 }
 0x199   :  { %v115_v12 = vmul.f32 %v113_v8, %v84_v22  ;;  %203 = vst [vmem:[#allocation7] sm:$0xf0] %v201_v9 }
 0x19a   :  { %v116_v15 = vmul.f32 %v114_v10, %v85_v23  ;;  %204 = vst [vmem:[#allocation7 + $0x8] sm:$0xf0] %v202_v11 }
 0x19b   :  { %v117_v16 = vadd.f32 %v115_v12, %v359_v0 }
 0x19c   :  { %v118_v17 = vadd.f32 %v116_v15, %v361_v1 }
 0x19d   :  { %119 = vst [vmem:[#allocation7] sm:$0xf] %v117_v16 }
 0x19e   :  { %120 = vst [vmem:[#allocation7 + $0x8] sm:$0xf] %v118_v17 }
 0x19f   :  { %298 = shalt.err (!%p295_p6)
}
 0x1a0   :  { %s299_s9 = scalar_lea.hbm %s397_s2, 256 }
 0x1a1   :  { %p300_p7 = scmp.ne.s32.totalorder %s397_s2, %s299_s9  ;;  %p303_p8 = scmp.lt.u32.totalorder %s299_s9, %s397_s2 }
 0x1a3   :  { %p305_p9 = pnand %p303_p8, %p300_p7 }
 0x1a5   :  { %308 = shalt.err (!%p305_p9)
}
 0x1a6   :  { %214 = dma.vmem_to_hbm [thread:$0]  %s212_s5, 256, %s397_s2, [#allocation4]  }
 0x1a7   :  { %313 = dma.done.wait [#allocation4], 256  }
 0x1a8   :  { %314 = vsyncadd [#allocation4], 4294967040 }
 0x1a9   :  { %218 = vsyncpa [#allocation3], 1 }
 0x1aa   :  { %219 = vsyncpa [#allocation6], 1 }
 0x1ab   :  { %220 = vsyncpa [#allocation4], 1 }

</bundles_post_ra>
